<compile_context>
chip_gen: v7x
topology: tpu7x:2x2x1
jax: 0.10.0
libtpu: 0.0.40
codegen_flags: <defaults>
</compile_context>

<pallas_src>
import functools

import jax
import jax.numpy as jnp
from jax.experimental import pallas as pl
from jax.experimental.pallas import tpu as pltpu


def _round_up(x, m):
    return ((x + m - 1) // m) * m


# 2 arrays (in + out) x 2 pipeline buffers x tile_bytes <= this budget.
_VMEM_TILE_BUDGET = 8 << 20  # 8 MiB, safe on v5e/v6e/v7x default scoped VMEM


def _pick_row_tile(n_rows, lane_width, cap=2048):
    """Row tile (multiple of 8) for a (rows, lane_width) f32 slab."""
    tm = _VMEM_TILE_BUDGET // (16 * lane_width)  # 16 = 2 arrays * 2 bufs * 4B
    tm = max(8, min(cap, (tm // 8) * 8))
    if n_rows < tm:
        tm = _round_up(max(n_rows, 1), 8)
    return tm


def _pick_spatial_tile(hw, c, cap=4096):
    """Lane (h*w) tile for a (tb, C, hw) f32 block (multiple of 128, or full)."""
    if hw < 128:
        return max(hw, 1)                         # full (last) dim -> allowed
    t = _VMEM_TILE_BUDGET // (16 * c)
    t = max(128, min(cap, (t // 128) * 128))
    return min(t, (hw // 128) * 128)


def _pick_batch_tile(bs, c, thw):
    """Batch tile so 2 arrays x 2 buffers x block stays inside the budget."""
    tb = _VMEM_TILE_BUDGET // (16 * c * thw)
    return max(1, min(bs, tb))


# ---------------------------------------------------------------------------
# Kernels
# ---------------------------------------------------------------------------
def _seg_matmul(v, seg):
    """~f32-accurate segment mean via MXU: v @ seg with bf16 hi/lo split."""
    v_hi = v.astype(jnp.bfloat16).astype(jnp.float32)
    v_lo = v - v_hi
    hi = jnp.dot(v_hi, seg, preferred_element_type=jnp.float32)
    lo = jnp.dot(v_lo, seg, preferred_element_type=jnp.float32)
    return hi + lo


def _ln_packed_kernel(x_ref, w_ref, b_ref, seg_ref, o_ref, *, eps):
    # x_ref: (tm, 128) with P = 128//C logical rows packed per vreg row.
    # seg_ref: (128, 128) block-diagonal matrix of 1/C entries.
    x = x_ref[...].astype(jnp.float32)
    seg = seg_ref[...]
    mean = _seg_matmul(x, seg)                  # per-segment mean, lane-bcast
    msq = _seg_matmul(x * x, seg)               # per-segment mean of x^2
    var = jnp.maximum(msq - mean * mean, 0.0)   # biased variance, one pass
    inv = jax.lax.rsqrt(var + eps)
    y = (x - mean) * inv
    y = y * w_ref[...] + b_ref[...]
    o_ref[...] = y.astype(o_ref.dtype)


def _ln_rows_kernel(x_ref, w_ref, b_ref, o_ref, *, eps):
    # Generic fallback: x_ref (tm, C), normalize over last axis (lanes/XLU).
    x = x_ref[...].astype(jnp.float32)
    mean = jnp.mean(x, axis=-1, keepdims=True)
    msq = jnp.mean(x * x, axis=-1, keepdims=True)
    var = jnp.maximum(msq - mean * mean, 0.0)
    inv = jax.lax.rsqrt(var + eps)
    y = (x - mean) * inv
    y = y * w_ref[...] + b_ref[...]
    o_ref[...] = y.astype(o_ref.dtype)


def _ln_cf_kernel(x_ref, w_ref, b_ref, o_ref, *, eps):
    # channel_first native layout: x_ref (tb, C, thw); reduce over C (sublanes).
    x = x_ref[...].astype(jnp.float32)
    mean = jnp.mean(x, axis=1, keepdims=True)
    msq = jnp.mean(x * x, axis=1, keepdims=True)
    var = jnp.maximum(msq - mean * mean, 0.0)
    inv = jax.lax.rsqrt(var + eps)
    y = (x - mean) * inv
    y = y * w_ref[...] + b_ref[...]
    o_ref[...] = y.astype(o_ref.dtype)


# ---------------------------------------------------------------------------
# Wrappers
# ---------------------------------------------------------------------------
def _layer_norm_channel_last_2d(x2d, weight, bias, eps):
    """LayerNorm over last axis of a (N, C) array."""
    n, c = x2d.shape
    w32 = weight.astype(jnp.float32)
    b32 = bias.astype(jnp.float32)

    if c < 128 and 128 % c == 0:
        # Lane-packed path: P rows per 128-lane vreg row, MXU segment means.
        p = 128 // c
        n_pad = _round_up(n, p)
        if n_pad != n:
            # Tiny pad so the (n, C) -> (m, P*C) repack is a pure reshape.
            x2d = jnp.pad(x2d, ((0, n_pad - n), (0, 0)))
        m = n_pad // p
        xp = x2d.reshape(m, p * c)              # (m, 128), lane-dense

        tm = _pick_row_tile(m, 128)
        wp = jnp.tile(w32, p).reshape(1, 128)
        bp = jnp.tile(b32, p).reshape(1, 128)
        lane_seg = jnp.arange(128, dtype=jnp.int32) // c
        seg = (lane_seg[:, None] == lane_seg[None, :]).astype(jnp.float32) / c

        kernel = functools.partial(_ln_packed_kernel, eps=eps)
        yp = pl.pallas_call(
            kernel,
            out_shape=jax.ShapeDtypeStruct((m, 128), xp.dtype),
            grid_spec=pltpu.PrefetchScalarGridSpec(
                num_scalar_prefetch=0,
                grid=(pl.cdiv(m, tm),),
                in_specs=[
                    pl.BlockSpec((tm, 128), lambda i: (i, 0)),
                    pl.BlockSpec((1, 128), lambda i: (0, 0)),
                    pl.BlockSpec((1, 128), lambda i: (0, 0)),
                    pl.BlockSpec((128, 128), lambda i: (0, 0)),
                ],
                out_specs=pl.BlockSpec((tm, 128), lambda i: (i, 0)),
            ),
            compiler_params=pltpu.CompilerParams(
                dimension_semantics=("parallel",)),
        )(xp, wp, bp, seg)
        y = yp.reshape(n_pad, c)
        return y[:n] if n_pad != n else y

    # Generic fallback (C >= 128 or 128 % C != 0): (tm, C) blocks.
    tm = _pick_row_tile(n, c)
    kernel = functools.partial(_ln_rows_kernel, eps=eps)
    return pl.pallas_call(
        kernel,
        out_shape=jax.ShapeDtypeStruct((n, c), x2d.dtype),
        grid_spec=pltpu.PrefetchScalarGridSpec(
            num_scalar_prefetch=0,
            grid=(pl.cdiv(n, tm),),
            in_specs=[
                pl.BlockSpec((tm, c), lambda i: (i, 0)),
                pl.BlockSpec((1, c), lambda i: (0, 0)),
                pl.BlockSpec((1, c), lambda i: (0, 0)),
            ],
            out_specs=pl.BlockSpec((tm, c), lambda i: (i, 0)),
        ),
        compiler_params=pltpu.CompilerParams(
            dimension_semantics=("parallel",)),
    )(x2d, w32.reshape(1, c), b32.reshape(1, c))


def _layer_norm_channel_first(x, weight, bias, eps):
    """LayerNorm over dim 1 of a (bs, C, h, w) array, native layout."""
    bs, c, h, w = x.shape
    hw = h * w
    x3 = x.reshape(bs, c, hw)                   # free reshape, no transpose
    thw = _pick_spatial_tile(hw, c)
    tb = _pick_batch_tile(bs, c, thw)
    w3 = weight.astype(jnp.float32).reshape(1, c, 1)
    b3 = bias.astype(jnp.float32).reshape(1, c, 1)

    kernel = functools.partial(_ln_cf_kernel, eps=eps)
    y3 = pl.pallas_call(
        kernel,
        out_shape=jax.ShapeDtypeStruct((bs, c, hw), x.dtype),
        grid_spec=pltpu.PrefetchScalarGridSpec(
            num_scalar_prefetch=0,
            grid=(pl.cdiv(bs, tb), pl.cdiv(hw, thw)),
            in_specs=[
                pl.BlockSpec((tb, c, thw), lambda b, j: (b, 0, j)),
                pl.BlockSpec((1, c, 1), lambda b, j: (0, 0, 0)),
                pl.BlockSpec((1, c, 1), lambda b, j: (0, 0, 0)),
            ],
            out_specs=pl.BlockSpec((tb, c, thw), lambda b, j: (b, 0, j)),
        ),
        compiler_params=pltpu.CompilerParams(
            dimension_semantics=("parallel", "parallel")),
    )(x3, w3, b3)
    return y3.reshape(bs, c, h, w)


class LayerNorm:
    """JAX/Pallas port of detrex LayerNorm (channel_last and channel_first)."""

    def __init__(self, normalized_shape, eps=1e-6, channel_last=True):
        c = int(normalized_shape)
        # Matches nn.Parameter(torch.ones(c)) / nn.Parameter(torch.zeros(c)).
        self.weight = jnp.ones((c,), jnp.float32)
        self.bias = jnp.zeros((c,), jnp.float32)
        self.eps = float(eps)
        self.channel_last = channel_last
        self.c = c

    def __call__(self, x):
        if self.channel_last:
            # x: (bs, h, w, C) — normalize over C (last dim).
            bs, h, w, c = x.shape
            assert c == self.c
            x2d = x.reshape(bs * h * w, c)
            y2d = _layer_norm_channel_last_2d(x2d, self.weight, self.bias,
                                              self.eps)
            return y2d.reshape(bs, h, w, c)
        else:
            # x: (bs, C, h, w) — normalize over C (dim 1), native layout.
            bs, c, h, w = x.shape
            assert c == self.c
            return _layer_norm_channel_first(x, self.weight, self.bias,
                                             self.eps)


# ---------------------------------------------------------------------------
# References + self-test
# ---------------------------------------------------------------------------
def _ref_layer_norm_last(x, w, b, eps):
    m = jnp.mean(x, axis=-1, keepdims=True)
    v = jnp.mean((x - m) ** 2, axis=-1, keepdims=True)
    return (x - m) / jnp.sqrt(v + eps) * w + b


def _ref_layer_norm_first(x, w, b, eps):
    u = jnp.mean(x, axis=1, keepdims=True)
    s = jnp.mean((x - u) ** 2, axis=1, keepdims=True)
    xn = (x - u) / jnp.sqrt(s + eps)
    return w[None, :, None, None] * xn + b[None, :, None, None]


def _check(got, want, tag):
    assert got.shape == want.shape, (tag, got.shape, want.shape)
    err = float(jnp.max(jnp.abs(got - want)))
    assert err < 1e-4, (tag, err)


if __name__ == "__main__":
    key = jax.random.PRNGKey(0)
    k1, k2, k3, k4, k5, k6, k7 = jax.random.split(key, 7)
    eps = 1e-6

    # Non-trivial affine params so scale/shift are actually exercised.
    def make_ln(c, channel_last, kw, kb):
        ln = LayerNorm(c, eps=eps, channel_last=channel_last)
        ln.weight = 1.0 + 0.05 * jax.random.normal(kw, (c,), dtype=jnp.float32)
        ln.bias = 0.05 * jax.random.normal(kb, (c,), dtype=jnp.float32)
        return ln

    # 1) channel_last, small C (lane-packed MXU path), even tiling.
    C = 32
    ln = make_ln(C, True, k3, k4)
    x = jax.random.normal(k1, (2, 16, 16, C), dtype=jnp.float32)
    y = jax.block_until_ready(ln(x))
    _check(y, _ref_layer_norm_last(x, ln.weight, ln.bias, eps), "last_packed")

    # 2) channel_last, small C, ragged rows (block > array rows).
    x = jax.random.normal(k5, (3, 10, 10, C), dtype=jnp.float32)
    y = jax.block_until_ready(ln(x))
    _check(y, _ref_layer_norm_last(x, ln.weight, ln.bias, eps),
           "last_packed_ragged")

    # 3) channel_last, large C (generic row-block path).
    C_big = 256
    ln_big = make_ln(C_big, True, k6, k7)
    x = jax.random.normal(k2, (2, 8, 8, C_big), dtype=jnp.float32)
    y = jax.block_until_ready(ln_big(x))
    _check(y, _ref_layer_norm_last(x, ln_big.weight, ln_big.bias, eps),
           "last_generic")

    # 4) channel_first, native layout, even tiling.
    ln_cf = make_ln(C, False, k3, k4)
    x = jax.random.normal(k2, (2, C, 16, 16), dtype=jnp.float32)
    y = jax.block_until_ready(ln_cf(x))
    _check(y, _ref_layer_norm_first(x, ln_cf.weight, ln_cf.bias, eps),
           "first_even")

    # 5) channel_first, ragged spatial extent (h*w not a multiple of 128).
    x = jax.random.normal(k1, (2, C, 13, 13), dtype=jnp.float32)
    y = jax.block_until_ready(ln_cf(x))
    _check(y, _ref_layer_norm_first(x, ln_cf.weight, ln_cf.bias, eps),
           "first_ragged")

    print("KERNEL_OK")
</pallas_src>

<mosaic_0001>
module attributes {stable_mosaic.version = 11 : i64} {
  func.func @_ln_packed_kernel(%arg0: i32, %arg1: memref<128x128xf32, #tpu.memory_space<vmem>>, %arg2: memref<1x128xf32, #tpu.memory_space<vmem>>, %arg3: memref<1x128xf32, #tpu.memory_space<vmem>>, %arg4: memref<128x128xf32, #tpu.memory_space<vmem>>, %arg5: memref<128x128xf32, #tpu.memory_space<vmem>>) attributes {dimension_semantics = [#tpu.dimension_semantics<parallel>], iteration_bounds = array<i64: 1>, scalar_prefetch = 0 : i64, scratch_operands = 0 : i64, tpu.core_type = #tpu.core_type<tc>, window_params = [{transform_indices = @transform_0, window_bounds = array<i64: 128, 128>}, {pipeline_mode = #tpu.pipeline_mode<synchronous>, transform_indices = @transform_1, window_bounds = array<i64: 1, 128>}, {pipeline_mode = #tpu.pipeline_mode<synchronous>, transform_indices = @transform_2, window_bounds = array<i64: 1, 128>}, {pipeline_mode = #tpu.pipeline_mode<synchronous>, transform_indices = @transform_3, window_bounds = array<i64: 128, 128>}, {transform_indices = @transform_4, window_bounds = array<i64: 128, 128>}]} {
    %c0 = arith.constant 0 : index
    %c0_0 = arith.constant 0 : index
    %0 = vector.load %arg1[%c0, %c0_0] : memref<128x128xf32, #tpu.memory_space<vmem>>, vector<128x128xf32>
    %c0_1 = arith.constant 0 : index
    %c0_2 = arith.constant 0 : index
    %1 = vector.load %arg4[%c0_1, %c0_2] : memref<128x128xf32, #tpu.memory_space<vmem>>, vector<128x128xf32>
    %2 = arith.truncf %0 : vector<128x128xf32> to vector<128x128xbf16>
    %3 = arith.extf %2 : vector<128x128xbf16> to vector<128x128xf32>
    %4 = arith.subf %0, %3 : vector<128x128xf32>
    %cst = arith.constant dense<0.000000e+00> : vector<128x128xf32>
    %5 = tpu.matmul %3, %1, %cst {dimension_numbers = #tpu.dot_dimension_numbers<[1], [0], [0], [1], [0, 0, 1, 1], [], []>} : vector<128x128xf32>, vector<128x128xf32>, vector<128x128xf32> -> vector<128x128xf32>
    %cst_3 = arith.constant dense<0.000000e+00> : vector<128x128xf32>
    %6 = tpu.matmul %4, %1, %cst_3 {dimension_numbers = #tpu.dot_dimension_numbers<[1], [0], [0], [1], [0, 0, 1, 1], [], []>} : vector<128x128xf32>, vector<128x128xf32>, vector<128x128xf32> -> vector<128x128xf32>
    %7 = arith.addf %5, %6 : vector<128x128xf32>
    %8 = arith.mulf %0, %0 : vector<128x128xf32>
    %9 = arith.truncf %8 : vector<128x128xf32> to vector<128x128xbf16>
    %10 = arith.extf %9 : vector<128x128xbf16> to vector<128x128xf32>
    %11 = arith.subf %8, %10 : vector<128x128xf32>
    %cst_4 = arith.constant dense<0.000000e+00> : vector<128x128xf32>
    %12 = tpu.matmul %10, %1, %cst_4 {dimension_numbers = #tpu.dot_dimension_numbers<[1], [0], [0], [1], [0, 0, 1, 1], [], []>} : vector<128x128xf32>, vector<128x128xf32>, vector<128x128xf32> -> vector<128x128xf32>
    %cst_5 = arith.constant dense<0.000000e+00> : vector<128x128xf32>
    %13 = tpu.matmul %11, %1, %cst_5 {dimension_numbers = #tpu.dot_dimension_numbers<[1], [0], [0], [1], [0, 0, 1, 1], [], []>} : vector<128x128xf32>, vector<128x128xf32>, vector<128x128xf32> -> vector<128x128xf32>
    %14 = arith.addf %12, %13 : vector<128x128xf32>
    %15 = arith.mulf %7, %7 : vector<128x128xf32>
    %16 = arith.subf %14, %15 : vector<128x128xf32>
    %cst_6 = arith.constant 0.000000e+00 : f32
    %17 = vector.broadcast %cst_6 : f32 to vector<128x128xf32>
    %18 = arith.maximumf %16, %17 : vector<128x128xf32>
    %cst_7 = arith.constant 9.99999997E-7 : f32
    %19 = vector.broadcast %cst_7 : f32 to vector<128x128xf32>
    %20 = arith.addf %18, %19 : vector<128x128xf32>
    %21 = math.rsqrt %20 : vector<128x128xf32>
    %22 = arith.subf %0, %7 : vector<128x128xf32>
    %23 = arith.mulf %22, %21 : vector<128x128xf32>
    %c0_8 = arith.constant 0 : index
    %c0_9 = arith.constant 0 : index
    %24 = vector.load %arg2[%c0_8, %c0_9] : memref<1x128xf32, #tpu.memory_space<vmem>>, vector<1x128xf32>
    %25 = vector.broadcast %24 : vector<1x128xf32> to vector<128x128xf32>
    %26 = arith.mulf %23, %25 : vector<128x128xf32>
    %c0_10 = arith.constant 0 : index
    %c0_11 = arith.constant 0 : index
    %27 = vector.load %arg3[%c0_10, %c0_11] : memref<1x128xf32, #tpu.memory_space<vmem>>, vector<1x128xf32>
    %28 = vector.broadcast %27 : vector<1x128xf32> to vector<128x128xf32>
    %29 = arith.addf %26, %28 : vector<128x128xf32>
    %c0_12 = arith.constant 0 : index
    %c0_13 = arith.constant 0 : index
    %30 = vector.load %arg5[%c0_12, %c0_13] : memref<128x128xf32, #tpu.memory_space<vmem>>, vector<128x128xf32>
    tpu.vector_store %arg5[%c0_12, %c0_13], %29 {strides = array<i32>} : memref<128x128xf32, #tpu.memory_space<vmem>>, vector<128x128xf32>,
    return
  }
  func.func @transform_0(%arg0: i32) -> (i32, i32) {
    %c0_i32 = arith.constant 0 : i32
    %c0_i32_0 = arith.constant 0 : i32
    return %arg0, %c0_i32 : i32, i32
  }
  func.func @transform_1(%arg0: i32) -> (i32, i32) {
    %c0_i32 = arith.constant 0 : i32
    %c0_i32_0 = arith.constant 0 : i32
    %c0_i32_1 = arith.constant 0 : i32
    return %c0_i32, %c0_i32_0 : i32, i32
  }
  func.func @transform_2(%arg0: i32) -> (i32, i32) {
    %c0_i32 = arith.constant 0 : i32
    %c0_i32_0 = arith.constant 0 : i32
    %c0_i32_1 = arith.constant 0 : i32
    return %c0_i32, %c0_i32_0 : i32, i32
  }
  func.func @transform_3(%arg0: i32) -> (i32, i32) {
    %c0_i32 = arith.constant 0 : i32
    %c0_i32_0 = arith.constant 0 : i32
    %c0_i32_1 = arith.constant 0 : i32
    return %c0_i32, %c0_i32_0 : i32, i32
  }
  func.func @transform_4(%arg0: i32) -> (i32, i32) {
    %c0_i32 = arith.constant 0 : i32
    %c0_i32_0 = arith.constant 0 : i32
    return %arg0, %c0_i32 : i32, i32
  }
}

</mosaic_0001>

<bundles_post_ra>
// kernel: tpu_custom_call.1
= control target key start
LH: loop header
LB: loop body
LE: loop exit
PB: predicated region body
PF: predicated region fallthrough
CT: control target
= control target key end

     0   :  { %9 = vsyncpa [#allocation3], 0  ;;  %s2150_s0 = inlined_call_operand.hbm [shape: f32[128,128], index: 0, kind: input, shape index: {}]   ;;  %s2151_s1 = inlined_call_operand.vmem [shape: f32[1,128], index: 1, kind: input, shape index: {}]   ;;  %s2152_s2 = inlined_call_operand.vmem [shape: f32[1,128], index: 2, kind: input, shape index: {}]   ;;  %s2153_s3 = inlined_call_operand.hbm [shape: f32[128,128], index: 3, kind: input, shape index: {}]   ;;  %s2154_s4 = inlined_call_operand.hbm [shape: f32[128,128], index: 4, kind: output, shape index: {}]  }
   0x1   :  { %10 = vsyncpa [#allocation6], 0 }
   0x2   :  { %11 = vsyncpa [#allocation4], 0  ;;  %s1569_s15 = smov [#allocation2]   ;;  %s1497_s19 = scalar_lea.hbm %s2150_s0, 2048 }
   0x3   :  { %s17_s16 = sshll.u32 %s1569_s15, 4  ;;  %p1498_p0 = scmp.ne.s32.totalorder %s2150_s0, %s1497_s19  ;;  %s18_s16 = int_to_ptr.vmem [resolvable:$true] %s17_s16 }
   0x4   :  { %p1501_p1 = scmp.lt.u32.totalorder %s1497_s19, %s2150_s0 }
   0x6   :  { %p1503_p2 = pnand %p1501_p1, %p1498_p0 }
   0x8   :  { %1506 = shalt.err (!%p1503_p2)
}
   0x9   :  { %s1507_s24 = scalar_lea.vmem %s18_s16, 2048  ;;  %p1512_p4 = scmp.lt.s32.totalorder %s18_s16, %s18_s16 }
   0xa   :  { %p1508_p3 = scmp.ne.s32.totalorder %s18_s16, %s1507_s24  ;;  %p1513_p5 = scmp.lt.s32.totalorder %s1507_s24, %s1507_s24 }
   0xc   :  { %p1514_p6 = por %p1513_p5, %p1512_p4 }
   0xe   :  { %p1515_p7 = pnand %p1514_p6, %p1508_p3 }
  0x10   :  { %1518 = shalt.err (!%p1515_p7)
}
  0x11   :  { %s1570_s25 = smov 128   ;;  %s1571_s26 = smov 8  }
  0x12   :  { %23 = dma.hbm_to_vmem [thread:$0]  %s2150_s0, 2048, %s18_s16, [#allocation3], %s1570_s25, %s1570_s25, %s1571_s26  }
  0x13   :  { %s1572_s29 = smov [#allocation5]   ;;  %s1519_s7 = scalar_lea.hbm %s2153_s3, 2048 }
  0x14   :  { %s33_s30 = sshll.u32 %s1572_s29, 4  ;;  %p1520_p8 = scmp.ne.s32.totalorder %s2153_s3, %s1519_s7  ;;  %s34_s30 = int_to_ptr.vmem [resolvable:$true] %s33_s30 }
  0x15   :  { %p1523_p9 = scmp.lt.u32.totalorder %s1519_s7, %s2153_s3 }
  0x17   :  { %p1525_p10 = pnand %p1523_p9, %p1520_p8 }
  0x19   :  { %1528 = shalt.err (!%p1525_p10)
}
  0x1a   :  { %s1529_s12 = scalar_lea.vmem %s34_s30, 2048  ;;  %p1534_p12 = scmp.lt.s32.totalorder %s34_s30, %s34_s30 }
  0x1b   :  { %p1530_p11 = scmp.ne.s32.totalorder %s34_s30, %s1529_s12  ;;  %p1535_p13 = scmp.lt.s32.totalorder %s1529_s12, %s1529_s12 }
  0x1d   :  { %p1536_p0 = por %p1535_p13, %p1534_p12 }
  0x1f   :  { %p1537_p1 = pnand %p1536_p0, %p1530_p11 }
  0x21   :  { %1540 = shalt.err (!%p1537_p1)
}
  0x22   :  { %39 = dma.hbm_to_vmem [thread:$0]  %s2153_s3, 2048, %s34_s30, [#allocation6], %s1570_s25, %s1570_s25, %s1571_s26  }
  0x23   :  { %1563 = dma.done.wait [#allocation3], 2048  }
  0x24   :  { %1564 = vsyncadd [#allocation3], 4294965248 }
  0x25   :  { %1565 = dma.done.wait [#allocation6], 2048  }
  0x26   :  { %1566 = vsyncadd [#allocation6], 4294965248  ;;  %v62_v0 = vld [vmem:[#allocation5] sm:$0xff]  ;;  %v63_v1 = vld [vmem:[#allocation5 + $0x8] sm:$0xff] }
  0x27   :  { %v64_v2 = vld [vmem:[#allocation5 + $0x10] sm:$0xff]  ;;  %v1629_v3 = vpack.c.bf16 %v63_v1, %v62_v0  ;;  %v65_v4 = vld [vmem:[#allocation5 + $0x18] sm:$0xff]  ;;  %v66_v6 = vld [vmem:[#allocation5 + $0x20] sm:$0xff] }
  0x28   :  { %v1631_v5 = vpack.c.bf16 %v65_v4, %v64_v2  ;;  %v67_v7 = vld [vmem:[#allocation5 + $0x28] sm:$0xff]  ;;  %v1641_v9 = vld [vmem:[#allocation2] sm:$0xff]  ;;  %v68_v11 = vld [vmem:[#allocation5 + $0x30] sm:$0xff] }
  0x29   :  { %1301 = vmatprep.subr.bf16.mxu0 %v1629_v3  ;;  %1365 = vmatprep.subr.bf16.mxu1 %v1629_v3  ;;  %v1639_v8 = vpack.c.bf16 %v67_v7, %v66_v6  ;;  %v1643_v10 = vld [vmem:[#allocation2 + $0x8] sm:$0xff]  ;;  %v69_v12 = vld [vmem:[#allocation5 + $0x38] sm:$0xff]  ;;  %v408_v14 = vmul.f32 %v1641_v9, %v1641_v9  ;;  %v70_v19 = vld [vmem:[#allocation5 + $0x40] sm:$0xff] }
  0x2a   :  { %1303 = vmatpush3.bf16.msra.mxu0 %v1629_v3  ;;  %1367 = vmatpush3.bf16.msra.mxu1 %v1629_v3  ;;  %v1647_v13 = vpack.c.bf16 %v1643_v10, %v1641_v9  ;;  %v1653_v15 = vmul.f32 %v1643_v10, %v1643_v10  ;;  %v1663_v18 = vpack.c.bf16 %v69_v12, %v68_v11  ;;  %v71_v20 = vld [vmem:[#allocation5 + $0x48] sm:$0xff]  ;;  %v72_v25 = vld [vmem:[#allocation5 + $0x50] sm:$0xff]  ;;  %v73_v26 = vld [vmem:[#allocation5 + $0x58] sm:$0xff] }
  0x2b   :  { %1305 = vmatprep.subr.bf16.mxu0 %v1631_v5  ;;  %1369 = vmatprep.subr.bf16.mxu1 %v1631_v5  ;;  %v1675_v24 = vpack.c.bf16 %v71_v20, %v70_v19  ;;  %v1681_v27 = vpack.c.bf16 %v73_v26, %v72_v25  ;;  %v74_v28 = vld [vmem:[#allocation5 + $0x60] sm:$0xff]  ;;  %v75_v29 = vld [vmem:[#allocation5 + $0x68] sm:$0xff]  ;;  %v1683_v30 = vld [vmem:[#allocation2 + $0x10] sm:$0xff] }
  0x2c   :  { %v86_v16 = vunpack.c.l.bf16 %v1647_v13  ;;  %v1659_v17 = vpack.c.bf16 %v1653_v15, %v408_v14  ;;  %v1685_v31 = vld [vmem:[#allocation2 + $0x18] sm:$0xff]  ;;  %v1691_v32 = vpack.c.bf16 %v75_v29, %v74_v28  ;;  %v76_v33 = vld [vmem:[#allocation5 + $0x70] sm:$0xff]  ;;  %v410_v35 = vmul.f32 %v1683_v30, %v1683_v30  ;;  %v1697_v37 = vld [vmem:[#allocation2 + $0x20] sm:$0xff] }
  0x2d   :  { %v77_v34 = vld [vmem:[#allocation5 + $0x78] sm:$0xff]  ;;  %v411_v36 = vmul.f32 %v1685_v31, %v1685_v31  ;;  %v1699_v38 = vld [vmem:[#allocation2 + $0x28] sm:$0xff]  ;;  %v1707_v40 = vpack.c.bf16 %v1685_v31, %v1683_v30  ;;  %v412_v42 = vmul.f32 %v1697_v37, %v1697_v37  ;;  %v1717_v44 = vld [vmem:[#allocation2 + $0x30] sm:$0xff]  ;;  %v87_v46 = vunpack.c.h.bf16 %v1647_v13 }
  0x2e   :  { %1307 = vmatpush3.bf16.msra.mxu0 %v1631_v5  ;;  %1371 = vmatpush3.bf16.msra.mxu1 %v1631_v5  ;;  %v102_v21 = vsub.f32 %v1641_v9, %v86_v16  ;;  %v432_v22 = vunpack.c.l.bf16 %v1659_v17  ;;  %v1703_v39 = vpack.c.bf16 %v77_v34, %v76_v33  ;;  %v413_v43 = vmul.f32 %v1699_v38, %v1699_v38  ;;  %v1719_v45 = vld [vmem:[#allocation2 + $0x38] sm:$0xff]  ;;  %v1741_v54 = vld [vmem:[#allocation2 + $0x40] sm:$0xff]  ;;  %v1743_v55 = vld [vmem:[#allocation2 + $0x48] sm:$0xff] }
  0x2f   :  { %1309 = vmatprep.subr.bf16.mxu0 %v1639_v8  ;;  %1373 = vmatprep.subr.bf16.mxu1 %v1639_v8  ;;  %v1711_v41 = vpack.c.bf16 %v411_v36, %v410_v35  ;;  %v433_v47 = vunpack.c.h.bf16 %v1659_v17  ;;  %v1727_v48 = vpack.c.bf16 %v1699_v38, %v1697_v37  ;;  %v414_v49 = vmul.f32 %v1717_v44, %v1717_v44  ;;  %v1778_v7 = vld [vmem:[#allocation2 + $0x50] sm:$0xff]  ;;  %v1780_v11 = vld [vmem:[#allocation2 + $0x58] sm:$0xff]  ;;  %v1815_v33 = vld [vmem:[#allocation2 + $0x60] sm:$0xff] }
  0x30   :  { %v448_v23 = vsub.f32 %v408_v14, %v432_v22  ;;  %1108 = vmatprep.mubr.f32.mxu0 %v102_v21  ;;  %v1733_v50 = vmul.f32 %v1719_v45, %v1719_v45  ;;  %v88_v51 = vunpack.c.l.bf16 %v1707_v40  ;;  %v1739_v53 = vpack.c.bf16 %v413_v43, %v412_v42  ;;  %v1817_v34 = vld [vmem:[#allocation2 + $0x68] sm:$0xff] }
  0x31   :  { %v434_v52 = vunpack.c.l.bf16 %v1711_v41  ;;  %v89_v56 = vunpack.c.h.bf16 %v1707_v40  ;;  %v103_v57 = vsub.f32 %v1643_v10, %v87_v46  ;;  %v449_v58 = vsub.f32 %v1653_v15, %v433_v47 }
  0x32   :  { %1311 = vmatpush3.bf16.msra.mxu0 %v1639_v8  ;;  %1375 = vmatpush3.bf16.msra.mxu1 %v1639_v8  ;;  %v435_v59 = vunpack.c.h.bf16 %v1711_v41  ;;  %v1755_v60 = vpack.c.bf16 %v1719_v45, %v1717_v44  ;;  %v90_v61 = vunpack.c.l.bf16 %v1727_v48  ;;  %v1761_v62 = vpack.c.bf16 %v1733_v50, %v414_v49 }
  0x33   :  { %1313 = vmatprep.subr.bf16.mxu0 %v1663_v18  ;;  %1377 = vmatprep.subr.bf16.mxu1 %v1663_v18  ;;  %v416_v63 = vmul.f32 %v1741_v54, %v1741_v54  ;;  %v1767_v0 = vmul.f32 %v1743_v55, %v1743_v55  ;;  %v104_v1 = vsub.f32 %v1683_v30, %v88_v51  ;;  %v2165_v4 = vunpack.c.l.bf16 %v1739_v53 }
  0x34   :  { %1220 = vmatprep.mubr.f32.mxu1 %v448_v23  ;;  %v450_v2 = vsub.f32 %v410_v35, %v434_v52  ;;  %v2160_v6 = vunpack.c.h.bf16 %v1727_v48  ;;  %v105_v12 = vsub.f32 %v1685_v31, %v89_v56  ;;  %v451_v14 = vsub.f32 %v411_v36, %v435_v59 }
  0x35   :  { %v2157_v15 = vunpack.c.h.bf16 %v1739_v53  ;;  %v2156_v19 = vunpack.c.l.bf16 %v1755_v60  ;;  %v106_v20 = vsub.f32 %v1697_v37, %v90_v61  ;;  %v2155_v21 = vunpack.c.l.bf16 %v1761_v62 }
  0x36   :  { %1315 = vmatpush3.bf16.msra.mxu0 %v1663_v18  ;;  %1379 = vmatpush3.bf16.msra.mxu1 %v1663_v18  ;;  %v1797_v23 = vpack.c.bf16 %v1743_v55, %v1741_v54  ;;  %v1800_v25 = vpack.c.bf16 %v1767_v0, %v416_v63  ;;  %v452_v26 = vsub.f32 %v412_v42, %v2165_v4  ;;  %v2158_v42 = vunpack.c.h.bf16 %v1755_v60 }
  0x37   :  { %1317 = vmatprep.subr.bf16.mxu0 %v1675_v24  ;;  %1381 = vmatprep.subr.bf16.mxu1 %v1675_v24  ;;  %v1808_v28 = vmul.f32 %v1780_v11, %v1780_v11  ;;  %v107_v29 = vsub.f32 %v1699_v38, %v2160_v6  ;;  %v453_v35 = vsub.f32 %v413_v43, %v2157_v15  ;;  %v2167_v13 = vunpack.c.l.bf16 %v1739_v53 }
  0x38   :  { %v108_v36 = vsub.f32 %v1717_v44, %v2156_v19  ;;  %v1834_v43 = vpack.c.bf16 %v1780_v11, %v1778_v7  ;;  %v2163_v19 = vunpack.c.h.bf16 %v1797_v23  ;;  %v2164_v15 = vunpack.c.h.bf16 %v1800_v25 }
  0x39   :  { %v2169_v17 = vunpack.c.h.bf16 %v1739_v53  ;;  %v2174_v40 = vunpack.c.l.bf16 %v1797_v23  ;;  %v2175_v41 = vunpack.c.l.bf16 %v1800_v25 }
  0x3a   :  { %1319 = vmatpush3.bf16.msra.mxu0 %v1675_v24  ;;  %1383 = vmatpush3.bf16.msra.mxu1 %v1675_v24 }
  0x3b   :  { %1321 = vmatprep.subr.bf16.mxu0 %v1681_v27  ;;  %1385 = vmatprep.subr.bf16.mxu1 %v1681_v27 }
  0x3e   :  { %1323 = vmatpush3.bf16.msra.mxu0 %v1681_v27  ;;  %1387 = vmatpush3.bf16.msra.mxu1 %v1681_v27 }
  0x3f   :  { %1325 = vmatprep.subr.bf16.mxu0 %v1691_v32  ;;  %1389 = vmatprep.subr.bf16.mxu1 %v1691_v32 }
  0x42   :  { %1327 = vmatpush3.bf16.msra.mxu0 %v1691_v32  ;;  %1391 = vmatpush3.bf16.msra.mxu1 %v1691_v32 }
  0x43   :  { %1329 = vmatprep.subr.bf16.mxu0 %v1703_v39  ;;  %1393 = vmatprep.subr.bf16.mxu1 %v1703_v39 }
  0x46   :  { %1331 = vmatpush3.bf16.msra.mxu0 %v1703_v39  ;;  %1395 = vmatpush3.bf16.msra.mxu1 %v1703_v39 }
  0x47   :  { %1333 = vmatprep.subr.bf16.mxu0 %v1629_v3  ;;  %1397 = vmatprep.subr.bf16.mxu1 %v1629_v3 }
  0x49   :  { %1109 = vmatmul.mubr.f32.vlgmr.msra.gmra.mrb[0].mxu0 %v103_v57  ;;  %1221 = vmatmul.mubr.f32.vlgmr.msra.gmra.mrb[0].mxu1 %v449_v58  ;;  %v2159_v57 = vunpack.c.h.bf16 %v1761_v62  ;;  %v454_v58 = vsub.f32 %v414_v49, %v2155_v21  ;;  %v1845_v49 = vld [vmem:[#allocation2 + $0x70] sm:$0xff]  ;;  %v1847_v21 = vld [vmem:[#allocation2 + $0x78] sm:$0xff] }
  0x4a   :  { %1335 = vmatpush3.bf16.msra.mxu0 %v1629_v3  ;;  %1399 = vmatpush3.bf16.msra.mxu1 %v1629_v3  ;;  %v418_v3 = vmul.f32 %v1778_v7, %v1778_v7 }
  0x4b   :  { %1111 = vmatprep.mubr.f32.mxu0 %v104_v1  ;;  %1223 = vmatprep.mubr.f32.mxu1 %v450_v2  ;;  %v2161_v1 = vunpack.c.l.bf16 %v1797_v23  ;;  %v2162_v2 = vunpack.c.l.bf16 %v1800_v25 }
  0x4c   :  { %1337 = vmatprep.subr.bf16.mxu0 %v1631_v5  ;;  %1401 = vmatprep.subr.bf16.mxu1 %v1631_v5 }
  0x4d   :  { %1112 = vmatmul.mubr.f32.gmra.mrb[2].mxu0 %v105_v12  ;;  %1224 = vmatmul.mubr.f32.gmra.mrb[2].mxu1 %v451_v14  ;;  %v1837_v12 = vpack.c.bf16 %v1808_v28, %v418_v3  ;;  %v420_v14 = vmul.f32 %v1815_v33, %v1815_v33 }
  0x4e   :  { %1339 = vmatpush3.bf16.msra.mxu0 %v1631_v5  ;;  %1403 = vmatpush3.bf16.msra.mxu1 %v1631_v5  ;;  %v421_v5 = vmul.f32 %v1817_v34, %v1817_v34 }
  0x4f   :  { %1114 = vmatprep.mubr.f32.mxu0 %v106_v20  ;;  %1226 = vmatprep.mubr.f32.mxu1 %v452_v26  ;;  %v109_v20 = vsub.f32 %v1719_v45, %v2158_v42  ;;  %v455_v26 = vsub.f32 %v1733_v50, %v2159_v57  ;;  %v96_v42 = vunpack.c.l.bf16 %v1834_v43  ;;  %v1867_v50 = vpack.c.bf16 %v1817_v34, %v1815_v33 }
  0x50   :  { %1341 = vmatprep.subr.bf16.mxu0 %v1639_v8  ;;  %1405 = vmatprep.subr.bf16.mxu1 %v1639_v8  ;;  %v442_v57 = vunpack.c.l.bf16 %v1837_v12  ;;  %v1870_v6 = vpack.c.bf16 %v421_v5, %v420_v14 }
  0x51   :  { %1115 = vmatmul.mubr.f32.gmra.mrb[4].mxu0 %v107_v29  ;;  %1227 = vmatmul.mubr.f32.gmra.mrb[4].mxu1 %v453_v35  ;;  %v110_v29 = vsub.f32 %v1741_v54, %v2161_v1  ;;  %v456_v35 = vsub.f32 %v416_v63, %v2162_v2  ;;  %v423_v1 = vmul.f32 %v1847_v21, %v1847_v21  ;;  %v443_v2 = vunpack.c.h.bf16 %v1837_v12 }
  0x52   :  { %1343 = vmatpush3.bf16.msra.mxu0 %v1639_v8  ;;  %1407 = vmatpush3.bf16.msra.mxu1 %v1639_v8  ;;  %v422_v8 = vmul.f32 %v1845_v49, %v1845_v49  ;;  %v111_v63 = vsub.f32 %v1743_v55, %v2163_v19  ;;  %v458_v19 = vsub.f32 %v418_v3, %v442_v57 }
  0x53   :  { %1117 = vmatprep.mubr.f32.mxu0 %v108_v36  ;;  %1229 = vmatprep.mubr.f32.mxu1 %v454_v58  ;;  %v457_v36 = vsub.f32 %v1767_v0, %v2164_v15  ;;  %v2166_v58 = vunpack.c.h.bf16 %v1834_v43  ;;  %v444_v0 = vunpack.c.l.bf16 %v1870_v6  ;;  %v1897_v15 = vpack.c.bf16 %v1847_v21, %v1845_v49 }
  0x54   :  { %1345 = vmatprep.subr.bf16.mxu0 %v1663_v18  ;;  %1409 = vmatprep.subr.bf16.mxu1 %v1663_v18  ;;  %v1899_v4 = vpack.c.bf16 %v423_v1, %v422_v8  ;;  %v459_v3 = vsub.f32 %v1808_v28, %v443_v2 }
  0x55   :  { %1118 = vmatmul.mubr.f32.gmra.mrb[6].mxu0 %v109_v20  ;;  %1230 = vmatmul.mubr.f32.gmra.mrb[6].mxu1 %v455_v26  ;;  %v112_v20 = vsub.f32 %v1778_v7, %v96_v42  ;;  %v98_v26 = vunpack.c.l.bf16 %v1867_v50 }
  0x56   :  { %1347 = vmatpush3.bf16.msra.mxu0 %v1663_v18  ;;  %1411 = vmatpush3.bf16.msra.mxu1 %v1663_v18  ;;  %v113_v18 = vsub.f32 %v1780_v11, %v2166_v58  ;;  %v100_v58 = vunpack.c.l.bf16 %v1897_v15  ;;  %v446_v28 = vunpack.c.l.bf16 %v1899_v4 }
  0x57   :  { %1120 = vmatprep.mubr.f32.mxu0 %v110_v29  ;;  %1232 = vmatprep.mubr.f32.mxu1 %v456_v35  ;;  %v99_v29 = vunpack.c.h.bf16 %v1867_v50  ;;  %v445_v35 = vunpack.c.h.bf16 %v1870_v6 }
  0x58   :  { %1349 = vmatprep.subr.bf16.mxu0 %v1675_v24  ;;  %1413 = vmatprep.subr.bf16.mxu1 %v1675_v24 }
  0x59   :  { %1121 = vmatmul.mubr.f32.gmra.mrb[8].mxu0 %v111_v63  ;;  %1233 = vmatmul.mubr.f32.gmra.mrb[8].mxu1 %v457_v36  ;;  %v114_v63 = vsub.f32 %v1815_v33, %v98_v26  ;;  %v460_v36 = vsub.f32 %v420_v14, %v444_v0  ;;  %v447_v14 = vunpack.c.h.bf16 %v1899_v4 }
  0x5a   :  { %1351 = vmatpush3.bf16.msra.mxu0 %v1675_v24  ;;  %1415 = vmatpush3.bf16.msra.mxu1 %v1675_v24  ;;  %v115_v24 = vsub.f32 %v1817_v34, %v99_v29 }
  0x5b   :  { %1123 = vmatprep.mubr.f32.mxu0 %v112_v20  ;;  %1235 = vmatprep.mubr.f32.mxu1 %v458_v19  ;;  %v461_v19 = vsub.f32 %v421_v5, %v445_v35  ;;  %v101_v20 = vunpack.c.h.bf16 %v1897_v15  ;;  %v463_v15 = vsub.f32 %v423_v1, %v447_v14 }
  0x5c   :  { %1353 = vmatprep.subr.bf16.mxu0 %v1681_v27  ;;  %1417 = vmatprep.subr.bf16.mxu1 %v1681_v27 }
  0x5d   :  { %1124 = vmatmul.mubr.f32.gmra.mrb[10].mxu0 %v113_v18  ;;  %1236 = vmatmul.mubr.f32.gmra.mrb[10].mxu1 %v459_v3  ;;  %v116_v18 = vsub.f32 %v1845_v49, %v100_v58  ;;  %v462_v3 = vsub.f32 %v422_v8, %v446_v28  ;;  %v117_v5 = vsub.f32 %v1847_v21, %v101_v20 }
  0x5e   :  { %1355 = vmatpush3.bf16.msra.mxu0 %v1681_v27  ;;  %1419 = vmatpush3.bf16.msra.mxu1 %v1681_v27  ;;  %v2171_v27 = vunpack.c.l.bf16 %v1761_v62 }
  0x5f   :  { %1126 = vmatprep.mubr.f32.mxu0 %v114_v63  ;;  %1238 = vmatprep.mubr.f32.mxu1 %v460_v36 }
  0x60   :  { %1357 = vmatprep.subr.bf16.mxu0 %v1691_v32  ;;  %1421 = vmatprep.subr.bf16.mxu1 %v1691_v32 }
  0x61   :  { %1127 = vmatmul.mubr.f32.gmra.mrb[12].mxu0 %v115_v24  ;;  %1239 = vmatmul.mubr.f32.gmra.mrb[12].mxu1 %v461_v19 }
  0x62   :  { %1359 = vmatpush3.bf16.msra.mxu0 %v1691_v32  ;;  %1423 = vmatpush3.bf16.msra.mxu1 %v1691_v32  ;;  %v2172_v32 = vunpack.c.h.bf16 %v1755_v60 }
  0x63   :  { %1129 = vmatprep.mubr.f32.mxu0 %v116_v18  ;;  %1241 = vmatprep.mubr.f32.mxu1 %v462_v3 }
  0x64   :  { %1361 = vmatprep.subr.bf16.mxu0 %v1703_v39  ;;  %1425 = vmatprep.subr.bf16.mxu1 %v1703_v39 }
  0x65   :  { %1130 = vmatmul.mubr.f32.gmra.mrb[14].mxu0 %v117_v5  ;;  %1242 = vmatmul.mubr.f32.gmra.mrb[14].mxu1 %v463_v15 }
  0x66   :  { %1363 = vmatpush3.bf16.msra.mxu0 %v1703_v39  ;;  %1427 = vmatpush3.bf16.msra.mxu1 %v1703_v39  ;;  %v2173_v39 = vunpack.c.h.bf16 %v1761_v62 }
  0x67   :  { %1164 = vmatprep.mubr.f32.mxu0 %v86_v16  ;;  %1276 = vmatprep.mubr.f32.mxu1 %v432_v22  ;;  %v2168_v16 = vunpack.c.h.bf16 %v1727_v48  ;;  %v2170_v22 = vunpack.c.l.bf16 %v1755_v60  ;;  %v2178_v48 = vunpack.c.h.bf16 %v1834_v43 }
  0x69   :  { %1165 = vmatmul.mubr.f32.vlgmr.msra.gmra.mrb[0].mxu0 %v87_v46  ;;  %1277 = vmatmul.mubr.f32.vlgmr.msra.gmra.mrb[0].mxu1 %v433_v47  ;;  %v2176_v46 = vunpack.c.h.bf16 %v1797_v23  ;;  %v2177_v47 = vunpack.c.h.bf16 %v1800_v25 }
  0x6a   :  { %1167 = vmatprep.mubr.f32.mxu0 %v88_v51  ;;  %1279 = vmatprep.mubr.f32.mxu1 %v434_v52 }
  0x6d   :  { %1168 = vmatmul.mubr.f32.gmra.mrb[2].mxu0 %v89_v56  ;;  %1280 = vmatmul.mubr.f32.gmra.mrb[2].mxu1 %v435_v59 }
  0x6e   :  { %1170 = vmatprep.mubr.f32.mxu0 %v90_v61  ;;  %1282 = vmatprep.mubr.f32.mxu1 %v2167_v13 }
  0x71   :  { %1171 = vmatmul.mubr.f32.gmra.mrb[4].mxu0 %v2168_v16  ;;  %1283 = vmatmul.mubr.f32.gmra.mrb[4].mxu1 %v2169_v17 }
  0x72   :  { %1173 = vmatprep.mubr.f32.mxu0 %v2170_v22  ;;  %1285 = vmatprep.mubr.f32.mxu1 %v2171_v27 }
  0x75   :  { %1174 = vmatmul.mubr.f32.gmra.mrb[6].mxu0 %v2172_v32  ;;  %1286 = vmatmul.mubr.f32.gmra.mrb[6].mxu1 %v2173_v39 }
  0x76   :  { %1176 = vmatprep.mubr.f32.mxu0 %v2174_v40  ;;  %1288 = vmatprep.mubr.f32.mxu1 %v2175_v41 }
  0x79   :  { %1177 = vmatmul.mubr.f32.gmra.mrb[8].mxu0 %v2176_v46  ;;  %1289 = vmatmul.mubr.f32.gmra.mrb[8].mxu1 %v2177_v47 }
  0x7a   :  { %1179 = vmatprep.mubr.f32.mxu0 %v96_v42  ;;  %1291 = vmatprep.mubr.f32.mxu1 %v442_v57 }
  0x7d   :  { %1180 = vmatmul.mubr.f32.gmra.mrb[10].mxu0 %v2178_v48  ;;  %1292 = vmatmul.mubr.f32.gmra.mrb[10].mxu1 %v443_v2 }
  0x7e   :  { %1182 = vmatprep.mubr.f32.mxu0 %v98_v26  ;;  %1294 = vmatprep.mubr.f32.mxu1 %v444_v0 }
  0x81   :  { %1183 = vmatmul.mubr.f32.gmra.mrb[12].mxu0 %v99_v29  ;;  %1295 = vmatmul.mubr.f32.gmra.mrb[12].mxu1 %v445_v35 }
  0x82   :  { %1185 = vmatprep.mubr.f32.mxu0 %v100_v58  ;;  %1297 = vmatprep.mubr.f32.mxu1 %v446_v28 }
  0x85   :  { %1186 = vmatmul.mubr.f32.gmra.mrb[14].mxu0 %v101_v20  ;;  %1298 = vmatmul.mubr.f32.gmra.mrb[14].mxu1 %v447_v14 }
 0x13c   :  { %v1997_v51 = vpop.f32.mrb[0].mxu0  ;;  %v1278_v52 = vpop.f32.mrb[0].mxu1 }
 0x13d   :  { %v755_v53 = vmul.f32 %v1997_v51, %v1997_v51  ;;  %v2001_v56 = vpop.f32.mrb[1].mxu0  ;;  %v675_v59 = vpop.f32.mrb[1].mxu1 }
 0x13e   :  { %v754_v60 = vmul.f32 %v2001_v56, %v2001_v56 }
 0x13f   :  { %v771_v61 = vsub.f32 %v1278_v52, %v755_v53 }
 0x140   :  { %v770_v62 = vsub.f32 %v675_v59, %v754_v60  ;;  %v2005_v4 = vpop.f32.mrb[2].mxu0  ;;  %v1281_v6 = vpop.f32.mrb[2].mxu1  ;;  %v835_v59 = vsub.f32 %v1643_v10, %v1997_v51 }
 0x141   :  { %v787_v23 = vmax.f32 %v771_v61, 0.0  ;;  %v757_v25 = vmul.f32 %v2005_v4, %v2005_v4  ;;  %v2009_v42 = vpop.f32.mrb[3].mxu0  ;;  %v685_v57 = vpop.f32.mrb[3].mxu1  ;;  %v837_v10 = vsub.f32 %v1685_v31, %v2005_v4 }
 0x142   :  { %v786_v1 = vmax.f32 %v770_v62, 0.0  ;;  %v756_v2 = vmul.f32 %v2009_v42, %v2009_v42  ;;  %v836_v4 = vsub.f32 %v1683_v30, %v2009_v42 }
 0x143   :  { %v803_v43 = vadd.f32 1e-06, %v787_v23  ;;  %v773_v12 = vsub.f32 %v1281_v6, %v757_v25  ;;  %v2042_v6 = vld [vmem:[%s2151_s1] ss:$0 sm:$0xff]  ;;  %v834_v23 = vsub.f32 %v1641_v9, %v2001_v56  ;;  %s1573_s1 = smov [#allocation7]  }
 0x144   :  { %v802_v50 = vadd.f32 1e-06, %v786_v1  ;;  %v772_v8 = vsub.f32 %v685_v57, %v756_v2  ;;  %v2013_v58 = vpop.f32.mrb[4].mxu0  ;;  %v1284_v26 = vpop.f32.mrb[4].mxu1 }
 0x145   :  { %1465 = vrsqrt.f32 %v803_v43  ;;  %v789_v0 = vmax.f32 %v773_v12, 0.0  ;;  %v759_v29 = vmul.f32 %v2013_v58, %v2013_v58  ;;  %v2017_v35 = vpop.f32.mrb[5].mxu0  ;;  %v695_v63 = vpop.f32.mrb[5].mxu1 }
 0x146   :  { %1467 = vrsqrt.f32 %v802_v50  ;;  %v788_v36 = vmax.f32 %v772_v8, 0.0  ;;  %v758_v28 = vmul.f32 %v2017_v35, %v2017_v35  ;;  %v2053_v8 = vld [vmem:[%s2152_s2] ss:$0 sm:$0xff]  ;;  %s933_s2 = sshll.u32 %s1573_s1, 4  ;;  %s934_s2 = int_to_ptr.vmem [resolvable:$true] %s933_s2 }
 0x147   :  { %v805_v24 = vadd.f32 1e-06, %v789_v0  ;;  %v775_v19 = vsub.f32 %v1284_v26, %v759_v29  ;;  %s1541_s17 = scalar_lea.vmem %s934_s2, 2048  ;;  %p1546_p3 = scmp.lt.s32.totalorder %s934_s2, %s934_s2 }
 0x148   :  { %v804_v20 = vadd.f32 1e-06, %v788_v36  ;;  %v774_v14 = vsub.f32 %v695_v63, %v758_v28  ;;  %v2021_v18 = vpop.f32.mrb[6].mxu0  ;;  %v1287_v3 = vpop.f32.mrb[6].mxu1  ;;  %p1542_p2 = scmp.ne.s32.totalorder %s934_s2, %s1541_s17  ;;  %p1547_p4 = scmp.lt.s32.totalorder %s1541_s17, %s1541_s17 }
 0x149   :  { %1469 = vrsqrt.f32 %v805_v24  ;;  %v791_v5 = vmax.f32 %v775_v19, 0.0  ;;  %v761_v15 = vmul.f32 %v2021_v18, %v2021_v18  ;;  %v2025_v13 = vpop.f32.mrb[7].mxu0  ;;  %v705_v16 = vpop.f32.mrb[7].mxu1 }
 0x14a   :  { %1471 = vrsqrt.f32 %v804_v20  ;;  %v790_v17 = vmax.f32 %v774_v14, 0.0  ;;  %v760_v22 = vmul.f32 %v2025_v13, %v2025_v13  ;;  %p1548_p5 = por %p1547_p4, %p1546_p3 }
 0x14b   :  { %v807_v27 = vadd.f32 1e-06, %v791_v5  ;;  %v777_v32 = vsub.f32 %v1287_v3, %v761_v15  ;;  %v839_v15 = vsub.f32 %v1699_v38, %v2013_v58 }
 0x14c   :  { %v806_v39 = vadd.f32 1e-06, %v790_v17  ;;  %v776_v40 = vsub.f32 %v705_v16, %v760_v22  ;;  %v2029_v41 = vpop.f32.mrb[8].mxu0  ;;  %v1290_v46 = vpop.f32.mrb[8].mxu1  ;;  %p1549_p6 = pnand %p1548_p5, %p1542_p2 }
 0x14d   :  { %1473 = vrsqrt.f32 %v807_v27  ;;  %v793_v47 = vmax.f32 %v777_v32, 0.0  ;;  %v763_v48 = vmul.f32 %v2029_v41, %v2029_v41  ;;  %v2033_v52 = vpop.f32.mrb[9].mxu0  ;;  %v715_v53 = vpop.f32.mrb[9].mxu1 }
 0x14e   :  { %1475 = vrsqrt.f32 %v806_v39  ;;  %v792_v60 = vmax.f32 %v776_v40, 0.0  ;;  %v762_v61 = vmul.f32 %v2033_v52, %v2033_v52 }
 0x14f   :  { %v1466_v62 = vpop.eup %1465  ;;  %v809_v25 = vadd.f32 1e-06, %v793_v47  ;;  %v779_v57 = vsub.f32 %v1290_v46, %v763_v48  ;;  %v838_v48 = vsub.f32 %v1697_v37, %v2017_v35 }
 0x150   :  { %v1468_v1 = vpop.eup %1467  ;;  %v851_v2 = vmul.f32 %v1466_v62, %v835_v59  ;;  %v808_v51 = vadd.f32 1e-06, %v792_v60  ;;  %v778_v43 = vsub.f32 %v715_v53, %v762_v61  ;;  %v2048_v12 = vpop.f32.mrb[10].mxu0 }
 0x151   :  { %v1293_v50 = vpop.f32.mrb[10].mxu1  ;;  %v850_v26 = vmul.f32 %v1468_v1, %v834_v23  ;;  %1477 = vrsqrt.f32 %v809_v25  ;;  %v795_v9 = vmax.f32 %v779_v57, 0.0  ;;  %v765_v56 = vmul.f32 %v2048_v12, %v2048_v12  ;;  %v2057_v0 = vpop.f32.mrb[11].mxu0 }
 0x152   :  { %v725_v29 = vpop.f32.mrb[11].mxu1  ;;  %v874_v31 = vmul.f32 %v2042_v6, %v851_v2  ;;  %1479 = vrsqrt.f32 %v808_v51  ;;  %v794_v63 = vmax.f32 %v778_v43, 0.0  ;;  %v764_v20 = vmul.f32 %v2057_v0, %v2057_v0 }
 0x153   :  { %v1470_v36 = vpop.eup %1469  ;;  %v873_v28 = vmul.f32 %v2042_v6, %v850_v26  ;;  %v811_v24 = vadd.f32 1e-06, %v795_v9  ;;  %v781_v19 = vsub.f32 %v1293_v50, %v765_v56  ;;  %v841_v51 = vsub.f32 %v1719_v45, %v2021_v18 }
 0x154   :  { %v1472_v14 = vpop.eup %1471  ;;  %v897_v3 = vadd.f32 %v2053_v8, %v874_v31  ;;  %v853_v5 = vmul.f32 %v1470_v36, %v837_v10  ;;  %v810_v16 = vadd.f32 1e-06, %v794_v63  ;;  %v2068_v17 = vpop.f32.mrb[12].mxu0  ;;  %v780_v46 = vsub.f32 %v725_v29, %v764_v20 }
 0x155   :  { %v1296_v30 = vpop.f32.mrb[12].mxu1  ;;  %v896_v42 = vadd.f32 %v2053_v8, %v873_v28  ;;  %v852_v22 = vmul.f32 %v1472_v14, %v836_v4  ;;  %1481 = vrsqrt.f32 %v811_v24  ;;  %v797_v27 = vmax.f32 %v781_v19, 0.0  ;;  %v2071_v32 = vpop.f32.mrb[13].mxu0 }
 0x156   :  { %v735_v39 = vpop.f32.mrb[13].mxu1  ;;  %913 = vst [vmem:[#allocation7 + $0x8] sm:$0xff] %v897_v3  ;;  %v876_v40 = vmul.f32 %v2042_v6, %v853_v5  ;;  %1483 = vrsqrt.f32 %v810_v16  ;;  %v767_v38 = vmul.f32 %v2068_v17, %v2068_v17  ;;  %v766_v59 = vmul.f32 %v2071_v32, %v2071_v32 }
 0x157   :  { %v1474_v58 = vpop.eup %1473  ;;  %912 = vst [vmem:[#allocation7] sm:$0xff] %v896_v42  ;;  %v875_v47 = vmul.f32 %v2042_v6, %v852_v22  ;;  %v813_v53 = vadd.f32 1e-06, %v797_v27  ;;  %v796_v23 = vmax.f32 %v780_v46, 0.0  ;;  %v840_v31 = vsub.f32 %v1717_v44, %v2025_v13 }
 0x158   :  { %v1476_v60 = vpop.eup %1475  ;;  %v899_v61 = vadd.f32 %v2053_v8, %v876_v40  ;;  %v855_v62 = vmul.f32 %v1474_v58, %v839_v15  ;;  %v783_v25 = vsub.f32 %v1296_v30, %v767_v38  ;;  %v2082_v57 = vpop.f32.mrb[14].mxu0  ;;  %v782_v9 = vsub.f32 %v735_v39, %v766_v59 }
 0x159   :  { %v1299_v1 = vpop.f32.mrb[14].mxu1  ;;  %v898_v2 = vadd.f32 %v2053_v8, %v875_v47  ;;  %v854_v10 = vmul.f32 %v1476_v60, %v838_v48  ;;  %1485 = vrsqrt.f32 %v813_v53  ;;  %v2087_v37 = vpop.f32.mrb[15].mxu0  ;;  %v812_v50 = vadd.f32 1e-06, %v796_v23 }
 0x15a   :  { %v745_v35 = vpop.f32.mrb[15].mxu1  ;;  %915 = vst [vmem:[#allocation7 + $0x18] sm:$0xff] %v899_v61  ;;  %v878_v43 = vmul.f32 %v2042_v6, %v855_v62  ;;  %v799_v26 = vmax.f32 %v783_v25, 0.0  ;;  %v769_v45 = vmul.f32 %v2082_v57, %v2082_v57  ;;  %v768_v18 = vmul.f32 %v2087_v37, %v2087_v37 }
 0x15b   :  { %v1478_v56 = vpop.eup %1477  ;;  %914 = vst [vmem:[#allocation7 + $0x10] sm:$0xff] %v898_v2  ;;  %v877_v29 = vmul.f32 %v2042_v6, %v854_v10  ;;  %1487 = vrsqrt.f32 %v812_v50  ;;  %v798_v20 = vmax.f32 %v782_v9, 0.0  ;;  %v843_v13 = vsub.f32 %v1743_v55, %v2029_v41 }
 0x15c   :  { %v1480_v4 = vpop.eup %1479  ;;  %v901_v63 = vadd.f32 %v2053_v8, %v878_v43  ;;  %v857_v36 = vmul.f32 %v1478_v56, %v841_v51  ;;  %v815_v28 = vadd.f32 1e-06, %v799_v26  ;;  %v785_v14 = vsub.f32 %v1299_v1, %v769_v45 }
 0x15d   :  { %v900_v24 = vadd.f32 %v2053_v8, %v877_v29  ;;  %v856_v19 = vmul.f32 %v1480_v4, %v840_v31  ;;  %v784_v3 = vsub.f32 %v745_v35, %v768_v18  ;;  %v842_v16 = vsub.f32 %v1741_v54, %v2033_v52 }
 0x15e   :  { %917 = vst [vmem:[#allocation7 + $0x28] sm:$0xff] %v901_v63  ;;  %v880_v44 = vmul.f32 %v2042_v6, %v857_v36  ;;  %1489 = vrsqrt.f32 %v815_v28  ;;  %v814_v30 = vadd.f32 1e-06, %v798_v20  ;;  %v801_v42 = vmax.f32 %v785_v14, 0.0 }
 0x15f   :  { %v1482_v5 = vpop.eup %1481  ;;  %916 = vst [vmem:[#allocation7 + $0x20] sm:$0xff] %v900_v24  ;;  %v879_v15 = vmul.f32 %v2042_v6, %v856_v19  ;;  %v800_v40 = vmax.f32 %v784_v3, 0.0  ;;  %v845_v58 = vsub.f32 %v1780_v11, %v2048_v12  ;;  %v844_v60 = vsub.f32 %v1778_v7, %v2057_v0 }
 0x160   :  { %v1484_v22 = vpop.eup %1483  ;;  %v903_v27 = vadd.f32 %v2053_v8, %v880_v44  ;;  %v859_v39 = vmul.f32 %v1482_v5, %v843_v13  ;;  %1491 = vrsqrt.f32 %v814_v30  ;;  %v817_v55 = vadd.f32 1e-06, %v801_v42 }
 0x161   :  { %v902_v46 = vadd.f32 %v2053_v8, %v879_v15  ;;  %v858_v38 = vmul.f32 %v1484_v22, %v842_v16  ;;  %v816_v47 = vadd.f32 1e-06, %v800_v40  ;;  %v847_v12 = vsub.f32 %v1817_v34, %v2068_v17 }
 0x162   :  { %919 = vst [vmem:[#allocation7 + $0x38] sm:$0xff] %v903_v27  ;;  %v882_v41 = vmul.f32 %v2042_v6, %v859_v39  ;;  %1493 = vrsqrt.f32 %v817_v55  ;;  %v846_v10 = vsub.f32 %v1815_v33, %v2071_v32  ;;  %v849_v43 = vsub.f32 %v1847_v21, %v2082_v57 }
 0x163   :  { %v1486_v54 = vpop.eup %1485  ;;  %918 = vst [vmem:[#allocation7 + $0x30] sm:$0xff] %v902_v46  ;;  %v881_v52 = vmul.f32 %v2042_v6, %v858_v38  ;;  %1495 = vrsqrt.f32 %v816_v47  ;;  %v848_v50 = vsub.f32 %v1845_v49, %v2087_v37 }
 0x164   :  { %v905_v48 = vadd.f32 %v2053_v8, %v882_v41  ;;  %v861_v53 = vmul.f32 %v1486_v54, %v845_v58 }
 0x165   :  { %v904_v59 = vadd.f32 %v2053_v8, %v881_v52  ;;  %v1488_v61 = vpop.eup %1487 }
 0x166   :  { %921 = vst [vmem:[#allocation7 + $0x48] sm:$0xff] %v905_v48  ;;  %v884_v62 = vmul.f32 %v2042_v6, %v861_v53  ;;  %v860_v11 = vmul.f32 %v1488_v61, %v844_v60 }
 0x167   :  { %920 = vst [vmem:[#allocation7 + $0x40] sm:$0xff] %v904_v59 }
 0x168   :  { %v1490_v23 = vpop.eup %1489  ;;  %v907_v25 = vadd.f32 %v2053_v8, %v884_v62  ;;  %v883_v1 = vmul.f32 %v2042_v6, %v860_v11 }
 0x169   :  { %v863_v2 = vmul.f32 %v1490_v23, %v847_v12 }
 0x16a   :  { %923 = vst [vmem:[#allocation7 + $0x58] sm:$0xff] %v907_v25  ;;  %v1492_v7 = vpop.eup %1491  ;;  %v906_v0 = vadd.f32 %v2053_v8, %v883_v1 }
 0x16b   :  { %v886_v51 = vmul.f32 %v2042_v6, %v863_v2  ;;  %v862_v35 = vmul.f32 %v1492_v7, %v846_v10 }
 0x16c   :  { %v1494_v34 = vpop.eup %1493  ;;  %922 = vst [vmem:[#allocation7 + $0x50] sm:$0xff] %v906_v0 }
 0x16d   :  { %v909_v17 = vadd.f32 %v2053_v8, %v886_v51  ;;  %v1496_v26 = vpop.eup %1495  ;;  %v885_v9 = vmul.f32 %v2042_v6, %v862_v35  ;;  %v865_v33 = vmul.f32 %v1494_v34, %v849_v43 }
 0x16e   :  { %v864_v32 = vmul.f32 %v1496_v26, %v848_v50 }
 0x16f   :  { %925 = vst [vmem:[#allocation7 + $0x68] sm:$0xff] %v909_v17  ;;  %v908_v56 = vadd.f32 %v2053_v8, %v885_v9  ;;  %v888_v29 = vmul.f32 %v2042_v6, %v865_v33 }
 0x170   :  { %v887_v21 = vmul.f32 %v2042_v6, %v864_v32 }
 0x171   :  { %924 = vst [vmem:[#allocation7 + $0x60] sm:$0xff] %v908_v56  ;;  %v911_v57 = vadd.f32 %v2053_v8, %v888_v29 }
 0x172   :  { %v910_v31 = vadd.f32 %v2053_v8, %v887_v21 }
 0x173   :  { %927 = vst [vmem:[#allocation7 + $0x78] sm:$0xff] %v911_v57 }
 0x174   :  { %926 = vst [vmem:[#allocation7 + $0x70] sm:$0xff] %v910_v31 }
 0x175   :  { %1552 = shalt.err (!%p1549_p6)
}
 0x176   :  { %s1553_s20 = scalar_lea.hbm %s2154_s4, 2048 }
 0x177   :  { %p1554_p7 = scmp.ne.s32.totalorder %s2154_s4, %s1553_s20  ;;  %p1557_p8 = scmp.lt.u32.totalorder %s1553_s20, %s2154_s4 }
 0x179   :  { %p1559_p9 = pnand %p1557_p8, %p1554_p7 }
 0x17b   :  { %1562 = shalt.err (!%p1559_p9)
}
 0x17c   :  { %939 = dma.vmem_to_hbm [thread:$0]  %s934_s2, 2048, %s2154_s4, [#allocation4], %s1570_s25, %s1570_s25, %s1571_s26  }
 0x17d   :  { %1567 = dma.done.wait [#allocation4], 2048  }
 0x17e   :  { %1568 = vsyncadd [#allocation4], 4294965248 }
 0x17f   :  { %943 = vsyncpa [#allocation3], 1 }
 0x180   :  { %944 = vsyncpa [#allocation6], 1 }
 0x181   :  { %945 = vsyncpa [#allocation4], 1 }

</bundles_post_ra>
